<compile_context>
chip_gen: v6e
topology: v6e:2x2x1
jax: 0.10.0
libtpu: 0.0.40
codegen_flags: <defaults>
</compile_context>

<pallas_src>
import functools

import jax
import jax.numpy as jnp
import numpy as np
from jax.experimental import pallas as pl
from jax.experimental.pallas import tpu as pltpu


_F32_TEMP_BYTES = 8                # live f32 temporaries per element in-kernel
_TARGET_BLOCK_BYTES = 4 << 20      # per-block cap -> keeps >=4 pipelined steps


def _vmem_caps():
    """Generation-aware (vmem_limit_bytes, single/two-pass block budget)."""
    cap = None
    try:
        info = pltpu.get_tpu_info()
        cap = getattr(info, "vmem_capacity_bytes", None)
    except Exception:
        cap = None
    if not cap:
        cap = 64 << 20             # conservative default: v7x per-TensorCore VMEM
    limit = max(32 << 20, min(cap - (8 << 20), 112 << 20))
    budget = limit - (8 << 20)     # headroom for Mosaic internal scratch
    return int(limit), int(budget)


def _cparams(limit, dimension_semantics):
    return pltpu.CompilerParams(dimension_semantics=dimension_semantics,
                                vmem_limit_bytes=int(limit))


def _largest_tile(total, unit, cap):
    """Largest multiple-of-`unit` divisor of `total` that is <= cap, or None."""
    best = None
    t = unit
    top = min(cap, total)
    while t <= top:
        if total % t == 0:
            best = t
        t += unit
    return best


def _single_pass_fits(B, H, itemsize, budget):
    # Per-step VMEM of one full-H column block: double-buffered in + out plus
    # in-kernel f32 temporaries.
    return H * B * (4 * itemsize + _F32_TEMP_BYTES) <= budget


def _pick_tile_h(B, H, itemsize, budget):
    """Hidden tile for the fused single-pass kernel, or None if B is too big.

    H must be a multiple of 128 here (the wrapper pads ragged H first).
    """
    per_col = B * (4 * itemsize + _F32_TEMP_BYTES)
    if 128 * per_col > budget:
        return None                         # whole batch column too big -> two-pass
    cap = min(budget // per_col, max(128, _TARGET_BLOCK_BYTES // (B * itemsize)))
    cap = max(128, min(cap, H))
    candidates = [t for t in range(128, cap + 1, 128) if H % t == 0]
    if not candidates:
        candidates = [128]

    def nsteps(t):
        return H // t

    # Prefer >=4 grid steps (pipeline overlap) with an even count (v7x megacore
    # balance), then progressively relax; pick the largest tile that qualifies.
    prefs = (
        lambda t: nsteps(t) >= 4 and nsteps(t) % 2 == 0,
        lambda t: nsteps(t) >= 4,
        lambda t: nsteps(t) >= 2 and nsteps(t) % 2 == 0,
        lambda t: nsteps(t) >= 2,
        lambda t: True,
    )
    for pred in prefs:
        sel = [t for t in candidates if pred(t)]
        if sel:
            return max(sel)
    return candidates[-1]


# ---------------------------------------------------------------------------
# Single-pass fused kernel: whole batch column (B, tile_h) lives in VMEM.
# ---------------------------------------------------------------------------
def _dice_kernel(alpha_ref, x_ref, o_ref, *, eps, n_rows):
    xf = x_ref[...].astype(jnp.float32)                 # stats + blend in f32
    denom = float(max(n_rows - 1, 1))                   # unbiased var like torch

    s = jnp.sum(xf, axis=0, keepdims=True)              # (1, th)
    sq = jnp.sum(xf * xf, axis=0, keepdims=True)        # (1, th)
    mean = s * (1.0 / n_rows)
    var = jnp.maximum((sq - n_rows * mean * mean) / denom, 0.0)
    rstd = jax.lax.rsqrt(var + eps)                     # EUP path

    p = jax.nn.sigmoid((xf - mean) * rstd)
    alpha = alpha_ref[0]
    # alpha*x*(1-p) + x*p == x * (alpha + (1-alpha)*p)
    blend = alpha + (1.0 - alpha) * p
    o_ref[...] = (xf * blend).astype(o_ref.dtype)       # cast only at the store


def _dice_single_pass(x, alpha, *, eps, tile_h, limit):
    B, H = x.shape
    itemsize = jnp.dtype(x.dtype).itemsize
    grid = (pl.cdiv(H, tile_h),)

    cost = pl.CostEstimate(
        flops=10 * B * H,
        transcendentals=B * H,
        bytes_accessed=2 * B * H * itemsize + 4,
    )

    return pl.pallas_call(
        functools.partial(_dice_kernel, eps=eps, n_rows=B),
        out_shape=jax.ShapeDtypeStruct((B, H), x.dtype),
        grid_spec=pltpu.PrefetchScalarGridSpec(
            num_scalar_prefetch=0,
            grid=grid,
            in_specs=[
                pl.BlockSpec(memory_space=pltpu.SMEM),            # alpha (1,)
                pl.BlockSpec((B, tile_h), lambda j: (0, j)),      # x tile
            ],
            out_specs=pl.BlockSpec((B, tile_h), lambda j: (0, j)),
        ),
        compiler_params=_cparams(limit, ("parallel",)),
        cost_estimate=cost,
    )(alpha, x)


# ---------------------------------------------------------------------------
# Two-pass fallback for large B (whole batch column does not fit in VMEM).
#   Pass 1: accumulate sum / sum-of-squares over a batch grid axis ("arbitrary")
#           into VMEM scratch; emit per-column mean and rsqrt(var + eps).
#   Pass 2: elementwise apply (all-"parallel" grid), own larger tile.
# ---------------------------------------------------------------------------
def _pick_stats_tiles(B, H, itemsize, budget, pack):
    # Per-step VMEM ≈ dbuf input (2*tb*th*itemsize) + f32 temps (~8*tb*th)
    # + sum/sq scratch and dbuf (1, th) f32 outputs (~40*th).  Prefer th == H
    # so each block DMA is a contiguous row range.
    per_col_min = pack * (2 * itemsize + 8) + 40
    th_cap = max(128, budget // per_col_min)
    th = H if H <= th_cap else _largest_tile(H, 128, th_cap)
    if th is None:
        th = 128
    per_row = th * (2 * itemsize + 8)
    tb_cap = max(pack, min(_TARGET_BLOCK_BYTES // max(1, th * itemsize),
                           (budget - 40 * th) // per_row))
    tb = _largest_tile(B, pack, tb_cap) or _largest_tile(B, 8, tb_cap)
    return tb, th


def _pick_apply_tiles(B, H, itemsize, budget, pack):
    # Per-step VMEM ≈ dbuf in+out (4*tb*th*itemsize) + f32 temps (~8*tb*th)
    # + dbuf (1, th) mean/rstd blocks (~16*th).  Prefer th == H (contiguous).
    per_col_min = pack * (4 * itemsize + 8) + 16
    th_cap = max(128, budget // per_col_min)
    th = H if H <= th_cap else _largest_tile(H, 128, th_cap)
    if th is None:
        th = 128
    per_row = th * (4 * itemsize + 8)
    tb_cap = max(pack, min(_TARGET_BLOCK_BYTES // max(1, th * itemsize),
                           (budget - 16 * th) // per_row))
    tb = _largest_tile(B, pack, tb_cap) or _largest_tile(B, 8, tb_cap)
    return tb, th


def _dice_stats_kernel(x_ref, mean_ref, rstd_ref, sum_sc, sq_sc, *, eps, n_total):
    i = pl.program_id(1)                    # batch-tile index (reduction axis)

    @pl.when(i == 0)
    def _():
        sum_sc[...] = jnp.zeros_like(sum_sc)
        sq_sc[...] = jnp.zeros_like(sq_sc)

    xf = x_ref[...].astype(jnp.float32)
    sum_sc[...] += jnp.sum(xf, axis=0, keepdims=True)
    sq_sc[...] += jnp.sum(xf * xf, axis=0, keepdims=True)

    @pl.when(i == pl.num_programs(1) - 1)
    def _():
        denom = float(max(n_total - 1, 1))
        mean = sum_sc[...] / n_total
        # Clamp: E[x^2]-mean^2 in f32 can go slightly negative (cancellation).
        var = jnp.maximum((sq_sc[...] - n_total * mean * mean) / denom, 0.0)
        mean_ref[...] = mean
        rstd_ref[...] = jax.lax.rsqrt(var + eps)


def _dice_apply_kernel(alpha_ref, x_ref, mean_ref, rstd_ref, o_ref):
    xf = x_ref[...].astype(jnp.float32)
    p = jax.nn.sigmoid((xf - mean_ref[...]) * rstd_ref[...])
    alpha = alpha_ref[0]
    blend = alpha + (1.0 - alpha) * p
    o_ref[...] = (xf * blend).astype(o_ref.dtype)


def _dice_two_pass(x, alpha, *, eps, budget, limit, pack):
    B, H = x.shape
    itemsize = jnp.dtype(x.dtype).itemsize

    tb_s, th_s = _pick_stats_tiles(B, H, itemsize, budget, pack)
    tb_a, th_a = _pick_apply_tiles(B, H, itemsize, budget, pack)
    if tb_s is None or tb_a is None:
        # TODO(synk): mask ragged batch tiles instead of requiring B % 8 == 0.
        raise NotImplementedError(
            "two-pass Dice path requires the batch size to be a multiple of 8")

    stats_cost = pl.CostEstimate(flops=5 * B * H, transcendentals=H,
                                 bytes_accessed=B * H * itemsize + 8 * H)
    mean, rstd = pl.pallas_call(
        functools.partial(_dice_stats_kernel, eps=eps, n_total=B),
        out_shape=(jax.ShapeDtypeStruct((1, H), jnp.float32),
                   jax.ShapeDtypeStruct((1, H), jnp.float32)),
        grid_spec=pltpu.PrefetchScalarGridSpec(
            num_scalar_prefetch=0,
            grid=(H // th_s, B // tb_s),          # reduction (batch) axis last
            in_specs=[pl.BlockSpec((tb_s, th_s), lambda j, i: (i, j))],
            out_specs=[pl.BlockSpec((1, th_s), lambda j, i: (0, j)),
                       pl.BlockSpec((1, th_s), lambda j, i: (0, j))],
            scratch_shapes=[pltpu.VMEM((1, th_s), jnp.float32),
                            pltpu.VMEM((1, th_s), jnp.float32)],
        ),
        compiler_params=_cparams(limit, ("parallel", "arbitrary")),
        cost_estimate=stats_cost,
    )(x)

    apply_cost = pl.CostEstimate(flops=7 * B * H, transcendentals=B * H,
                                 bytes_accessed=2 * B * H * itemsize + 8 * H + 4)
    return pl.pallas_call(
        _dice_apply_kernel,
        out_shape=jax.ShapeDtypeStruct((B, H), x.dtype),
        grid_spec=pltpu.PrefetchScalarGridSpec(
            num_scalar_prefetch=0,
            grid=(H // th_a, B // tb_a),
            in_specs=[
                pl.BlockSpec(memory_space=pltpu.SMEM),                # alpha (1,)
                pl.BlockSpec((tb_a, th_a), lambda j, i: (i, j)),
                pl.BlockSpec((1, th_a), lambda j, i: (0, j)),
                pl.BlockSpec((1, th_a), lambda j, i: (0, j)),
            ],
            out_specs=pl.BlockSpec((tb_a, th_a), lambda j, i: (i, j)),
        ),
        compiler_params=_cparams(limit, ("parallel", "parallel")),
        cost_estimate=apply_cost,
    )(alpha, x, mean, rstd)


# ---------------------------------------------------------------------------
# Public wrapper
# ---------------------------------------------------------------------------
def dice(x, alpha, *, eps=1e-9, force_two_pass=False):
    """Dice activation: alpha*x*(1-p) + x*p with p = sigmoid((x - mean0)/std0)."""
    B, orig_H = x.shape
    H = orig_H
    itemsize = jnp.dtype(x.dtype).itemsize
    limit, budget = _vmem_caps()
    pack = (8 * 4) // itemsize          # sublane pack: f32 -> 8, bf16 -> 16, i8 -> 32

    if H % 128 != 0:
        if (not force_two_pass) and _single_pass_fits(B, H, itemsize, budget):
            # Block == full array dims is legal even for non-128-multiple H.
            return _dice_single_pass(x, alpha, eps=eps, tile_h=H, limit=limit)
        # TODO(synk): the pad costs one extra HBM pass; a masked-lane kernel
        # would avoid it for very large ragged-H inputs.
        H_pad = ((H + 127) // 128) * 128
        x = jnp.pad(x, ((0, 0), (0, H_pad - H)))
        H = H_pad

    tile_h = None if force_two_pass else _pick_tile_h(B, H, itemsize, budget)
    if tile_h is not None:
        out = _dice_single_pass(x, alpha, eps=eps, tile_h=tile_h, limit=limit)
    else:
        out = _dice_two_pass(x, alpha, eps=eps, budget=budget, limit=limit,
                             pack=pack)
    if H != orig_H:
        out = out[:, :orig_H]
    return out


def dice_ref(x, alpha, eps=1e-9):
    x = x.astype(jnp.float32)
    mean = jnp.mean(x, axis=0)
    var = jnp.var(x, axis=0, ddof=1)                 # unbiased, like torch.var
    norm_x = (x - mean) / jnp.sqrt(var + eps)
    p = jax.nn.sigmoid(norm_x)
    return alpha[0] * x * (1.0 - p) + x * p


if __name__ == "__main__":
    key = jax.random.PRNGKey(0)
    B, H = 8, 256
    x = jax.random.normal(key, (B, H), dtype=jnp.float32)

    # Matches nn.Parameter(torch.zeros((1,))).
    alpha0 = jnp.zeros((1,), dtype=jnp.float32)
    out = jax.block_until_ready(dice(x, alpha0))
    np.testing.assert_allclose(np.asarray(out), np.asarray(dice_ref(x, alpha0)),
                               rtol=1e-5, atol=1e-5)

    # Non-zero alpha exercises the simplified blend x*(alpha + (1-alpha)*p).
    alpha1 = jnp.full((1,), 0.25, dtype=jnp.float32)
    out1 = jax.block_until_ready(dice(x, alpha1))
    np.testing.assert_allclose(np.asarray(out1), np.asarray(dice_ref(x, alpha1)),
                               rtol=1e-5, atol=1e-5)

    # bf16 input path: stats + blend in f32, cast only at the store.
    xb = x.astype(jnp.bfloat16)
    outb = jax.block_until_ready(dice(xb, alpha1))
    refb = dice_ref(xb.astype(jnp.float32), alpha1)
    np.testing.assert_allclose(np.asarray(outb).astype(np.float32),
                               np.asarray(refb), rtol=2e-2, atol=2e-2)

    # Ragged H (not a multiple of 128): full-H single-pass block.
    xr = jax.random.normal(jax.random.PRNGKey(2), (8, 200), dtype=jnp.float32)
    outr = jax.block_until_ready(dice(xr, alpha1))
    np.testing.assert_allclose(np.asarray(outr), np.asarray(dice_ref(xr, alpha1)),
                               rtol=1e-5, atol=1e-5)

    # Large-B two-pass fallback, exercised at a small shape by forcing it.
    x2 = jax.random.normal(jax.random.PRNGKey(1), (16, 256), dtype=jnp.float32)
    out2 = jax.block_until_ready(dice(x2, alpha1, force_two_pass=True))
    np.testing.assert_allclose(np.asarray(out2), np.asarray(dice_ref(x2, alpha1)),
                               rtol=1e-4, atol=1e-4)

    # Forced two-pass with ragged H exercises the pad + slice path.
    out3 = jax.block_until_ready(dice(xr, alpha1, force_two_pass=True))
    np.testing.assert_allclose(np.asarray(out3), np.asarray(dice_ref(xr, alpha1)),
                               rtol=1e-4, atol=1e-4)

    print("KERNEL_OK")
</pallas_src>

<mosaic_0001>
module attributes {stable_mosaic.version = 11 : i64} {
  func.func @_dice_kernel(%arg0: i32, %arg1: memref<1xf32, #tpu.memory_space<smem>>, %arg2: memref<8x128xf32, #tpu.memory_space<vmem>>, %arg3: memref<8x128xf32, #tpu.memory_space<vmem>>) attributes {dimension_semantics = [#tpu.dimension_semantics<parallel>], iteration_bounds = array<i64: 2>, scalar_prefetch = 0 : i64, scratch_operands = 0 : i64, tpu.core_type = #tpu.core_type<tc>, window_params = [{transform_indices = @transform_0, window_bounds = array<i64: 1>}, {transform_indices = @transform_1, window_bounds = array<i64: 8, 128>}, {transform_indices = @transform_2, window_bounds = array<i64: 8, 128>}]} {
    %c0 = arith.constant 0 : index
    %c0_0 = arith.constant 0 : index
    %0 = vector.load %arg2[%c0, %c0_0] : memref<8x128xf32, #tpu.memory_space<vmem>>, vector<8x128xf32>
    %cst = arith.constant dense<0.000000e+00> : vector<128xf32>
    %1 = vector.multi_reduction <add>, %0, %cst [0] : vector<8x128xf32> to vector<128xf32>
    %2 = vector.shape_cast %1 : vector<128xf32> to vector<1x128xf32>
    %3 = arith.mulf %0, %0 : vector<8x128xf32>
    %cst_1 = arith.constant dense<0.000000e+00> : vector<128xf32>
    %4 = vector.multi_reduction <add>, %3, %cst_1 [0] : vector<8x128xf32> to vector<128xf32>
    %5 = vector.shape_cast %4 : vector<128xf32> to vector<1x128xf32>
    %cst_2 = arith.constant 1.250000e-01 : f32
    %6 = vector.broadcast %cst_2 : f32 to vector<1x128xf32>
    %7 = arith.mulf %2, %6 : vector<1x128xf32>
    %cst_3 = arith.constant 8.000000e+00 : f32
    %8 = vector.broadcast %cst_3 : f32 to vector<1x128xf32>
    %9 = arith.mulf %8, %7 : vector<1x128xf32>
    %10 = arith.mulf %9, %7 : vector<1x128xf32>
    %11 = arith.subf %5, %10 : vector<1x128xf32>
    %cst_4 = arith.constant 7.000000e+00 : f32
    %12 = vector.broadcast %cst_4 : f32 to vector<1x128xf32>
    %13 = arith.divf %11, %12 : vector<1x128xf32>
    %cst_5 = arith.constant 0.000000e+00 : f32
    %14 = vector.broadcast %cst_5 : f32 to vector<1x128xf32>
    %15 = arith.maximumf %13, %14 : vector<1x128xf32>
    %cst_6 = arith.constant 9.99999971E-10 : f32
    %16 = vector.broadcast %cst_6 : f32 to vector<1x128xf32>
    %17 = arith.addf %15, %16 : vector<1x128xf32>
    %18 = math.rsqrt %17 : vector<1x128xf32>
    %19 = vector.broadcast %7 : vector<1x128xf32> to vector<8x128xf32>
    %20 = arith.subf %0, %19 : vector<8x128xf32>
    %21 = vector.broadcast %18 : vector<1x128xf32> to vector<8x128xf32>
    %22 = arith.mulf %20, %21 : vector<8x128xf32>
    %23 = arith.negf %22 : vector<8x128xf32>
    %24 = math.exp %23 : vector<8x128xf32>
    %cst_7 = arith.constant 1.000000e+00 : f32
    %25 = vector.broadcast %cst_7 : f32 to vector<8x128xf32>
    %26 = arith.addf %25, %24 : vector<8x128xf32>
    %27 = arith.divf %25, %26 : vector<8x128xf32>
    %c0_8 = arith.constant 0 : index
    %28 = memref.load %arg1[%c0_8] : memref<1xf32, #tpu.memory_space<smem>>
    %cst_9 = arith.constant 1.000000e+00 : f32
    %29 = arith.subf %cst_9, %28 : f32
    %30 = vector.broadcast %29 : f32 to vector<8x128xf32>
    %31 = arith.mulf %30, %27 : vector<8x128xf32>
    %32 = vector.broadcast %28 : f32 to vector<8x128xf32>
    %33 = arith.addf %32, %31 : vector<8x128xf32>
    %34 = arith.mulf %0, %33 : vector<8x128xf32>
    %c0_10 = arith.constant 0 : index
    %c0_11 = arith.constant 0 : index
    %35 = vector.load %arg3[%c0_10, %c0_11] : memref<8x128xf32, #tpu.memory_space<vmem>>, vector<8x128xf32>
    tpu.vector_store %arg3[%c0_10, %c0_11], %34 {strides = array<i32>} : memref<8x128xf32, #tpu.memory_space<vmem>>, vector<8x128xf32>,
    return
  }
  func.func @transform_0(%arg0: i32) -> i32 {
    %c0_i32 = arith.constant 0 : i32
    %c0_i32_0 = arith.constant 0 : i32
    return %c0_i32 : i32
  }
  func.func @transform_1(%arg0: i32) -> (i32, i32) {
    %c0_i32 = arith.constant 0 : i32
    %c0_i32_0 = arith.constant 0 : i32
    return %c0_i32, %arg0 : i32, i32
  }
  func.func @transform_2(%arg0: i32) -> (i32, i32) {
    %c0_i32 = arith.constant 0 : i32
    %c0_i32_0 = arith.constant 0 : i32
    return %c0_i32, %arg0 : i32, i32
  }
}

</mosaic_0001>

<bundles_post_ra>
// kernel: tpu_custom_call.1
= control target key start
LH: loop header
LB: loop body
LE: loop exit
PB: predicated region body
PF: predicated region fallthrough
CT: control target
= control target key end

     0   :  { %s607_s0 = inlined_call_operand.<no memory space> [shape: f32[1], index: 0, kind: input, shape index: {}]   ;;  %s608_s1 = inlined_call_operand.hbm [shape: f32[8,256], index: 1, kind: input, shape index: {}]   ;;  %s609_s2 = inlined_call_operand.hbm [shape: f32[8,256], index: 2, kind: output, shape index: {}]  }
   0x1   :  { %7 = sst [smem:[#allocation2]] %s607_s0 }
   0x2   :  { %8 = vsyncpa [#allocation4], 0 }
   0x3   :  { %10 = vsyncpa [#allocation4 + $0x1], 0 }
   0x4   :  { %11 = vsyncpa [#allocation5], 0 }
   0x5   :  { %13 = vsyncpa [#allocation5 + $0x1], 0  ;;  %s462_s11 = smov 0   ;;  %s464_s12 = smov 0  }
   0x6   :  { %s466_s13 = smov 0   ;;  %s468_s14 = smov 0  }
   0x7 LB: > { %s483_s0 = sadd.s32 4294967295, %s440_s14   ;;  %s283_s15 = sadd.s32 4294967294, %s440_s14   ;;  %s440_s14 = sphi %s468_s14, %s626_s14   ;;  %s436_s13 = sphi %s466_s13, %s625_s13   ;;  %s432_s12 = sphi %s464_s12, %s624_s12   ;;  %s428_s11 = sphi %s462_s11, %s623_s11  }
   0x8   : > { %s487_s16 = sadd.s32 1, %s440_s14   ;;  %s47_s17 = sadd.s32 1, %s436_s13 }
   0x9   : > { %s44_s18 = ssub.s32 %s440_s14, %s487_s16  ;;  %p54_p0 = scmp.ne.s32.totalorder %s436_s13, %s432_s12 }
   0xa   : > { %p45_p1 = scmp.eq.s32.totalorder %s44_s18, 0  ;;  %p55_p2 = scmp.eq.s32.totalorder %s440_s14, 0 }
   0xb   : > { %p60_p3 = scmp.ne.s32.totalorder %s432_s12, %s428_s11  ;;  %p61_p4 = scmp.eq.s32.totalorder %s483_s0, 0 }
   0xc   : > { %s499_s19 = scalar_select %p45_p1, %s436_s13, %s47_s17  }
   0xd   : > { %p501_p5 = por %p55_p2, %p54_p0  ;;  %p505_p6 = por %p61_p4, %p60_p3 }
   0xe   : > { %p84_p7 = scmp.eq.s32.totalorder %s483_s0, 1  ;;  %p90_p8 = scmp.eq.s32.totalorder %s283_s15, 1 }
   0xf   : > { %s613_s21 = scalar_select %p505_p6, 1, 0 }
  0x10   : > { %p308_p10 = scmp.lt.s32.totalorder %s440_s14, 2  ;;  %p512_p11 = por %p84_p7, %p54_p0 }
  0x11   : > { %p516_p12 = por %p90_p8, %p60_p3  ;;  %s113_s24 = sand.u32 1, %s436_s13  }
  0x12   : > { %s614_s22 = scalar_select %p512_p11, 1, 0 }
  0x13   : > { %s615_s23 = scalar_select %p516_p12, 1, 0 }
  0x14   : > { %s287_s25 = sshll.u32 %s440_s14, 7  ;;  %s286_s26 = sshll.u32 %s113_s24, 3 }
  0x15   : > { %s525_s29 = scalar_lea.hbm %s608_s1, %s287_s25  ;;  %s117_s30 = scalar_lea.vmem [#allocation3], %s286_s26 }
  0x16   : > { %s124_s3 = sshll.u32 %s117_s30, 4  ;;  %p529_p13 = pnand %p308_p10, %p501_p5  ;;  %s533_s3 = int_to_ptr.vmem [resolvable:$true] %s124_s3 }
  0x17   : > { %s114_s5 = scalar_lea.sflag [#allocation4], %s113_s24  ;;  %s348_s6 = scalar_lea.hbm %s525_s29, 128 }
  0x18   : > { %p349_p2 = scmp.ne.s32.totalorder %s525_s29, %s348_s6  ;;  %p350_p3 = pneg %p529_p13 }
  0x19   : > { %s353_s9 = scalar_lea.hbm %s608_s1, 256  ;;  %p354_p5 = scmp.lt.s32.totalorder %s525_s29, %s608_s1 }
  0x1a   : > { %p351_p4 = pnand %p350_p3, %p349_p2  ;;  %p355_p8 = scmp.lt.s32.totalorder %s353_s9, %s348_s6 }
  0x1c   : > { %p352_p7 = pneg %p351_p4  ;;  %p356_p10 = por %p355_p8, %p354_p5 }
  0x1e   : > { %p357_p9 = pnand %p356_p10, %p352_p7 }
  0x20   : > { %360 = shalt.err (!%p357_p9)
}
  0x21   : > { %s361_s17 = scalar_lea.vmem %s533_s3, 128  ;;  %s442_s18 = smov [#allocation3]  }
  0x22   : > { %p362_p0 = scmp.ne.s32.totalorder %s533_s3, %s361_s17  ;;  %s366_s20 = sshll.u32 %s442_s18, 4  ;;  %s367_s20 = int_to_ptr.vmem [resolvable:$false] %s366_s20 }
  0x23   : > { %s368_s24 = scalar_lea.vmem %s367_s20, 256  ;;  %p369_p4 = scmp.lt.s32.totalorder %s533_s3, %s367_s20 }
  0x24   : > { %p364_p1 = pnand %p362_p0, %p350_p3  ;;  %p370_p12 = scmp.lt.s32.totalorder %s368_s24, %s361_s17 }
  0x26   : > { %p365_p2 = pneg %p364_p1  ;;  %p371_p11 = por %p370_p12, %p369_p4 }
  0x28   : > { %p372_p6 = pnand %p371_p11, %p365_p2 }
  0x2a   : > { %375 = shalt.err (!%p372_p6)
}
  0x2b   : > { %303 = dma.hbm_to_vmem [thread:$0]  (!%p529_p13), %s525_s29, 128, %s533_s3, %s114_s5  }
  0x2c   : > { %p617_p9 = scmp.lt.s32.totalorder %s440_s14, 3  ;;  %p618_p7 = scmp.ge.s32.totalorder %s440_s14, 1 }
  0x2e   : > { %p130_p0 = pnand %p618_p7, %p617_p9 }
  0x2f   : > { %s560_s25 = sand.u32 (!%p130_p0), 1, %s432_s12   ;;  %p619_p6 = scmp.ne.s32.totalorder (!%p130_p0), %s613_s21, 0 }
  0x30   : > { %133 = sbr.rel (%p130_p0) target bundleno = 148 (0x94), region = 28  ;;  %s289_s26 = sshll.u32 (!%p130_p0), %s560_s25, 3 }
  0x31   : > { %s136_s27 = scalar_lea.sflag (!%p130_p0), [#allocation4], %s560_s25  ;;  %s139_s28 = scalar_lea.vmem (!%p130_p0), [#allocation3], %s289_s26 }
  0x35   : > { %419 = dma.done.wait (%p619_p6), %s136_s27, 128  }
  0x36   : > { %421 = vsyncadd (%p619_p6), %s136_s27, 4294967168  ;;  %v160_v0 = vld [vmem:[%s139_s28] sm:$0xff]  ;;  %s191_s21 = sld [smem:[#allocation2]]  ;;  %s159_s30 = scalar_lea.vmem [#allocation6], %s289_s26 }
  0x37   : > { %v161_v1 = vrot.slane %v160_v0, 4  ;;  %v167_v2 = vmul.f32 %v160_v0, %v160_v0  ;;  %s213_s3 = sshll.u32 %s159_s30, 4  ;;  %s293_s4 = sshll.u32 %s483_s0, 7  ;;  %s214_s3 = int_to_ptr.vmem [resolvable:$true] %s213_s3 }
  0x38   : > { %s211_s7 = scalar_lea.hbm %s609_s2, %s293_s4  ;;  %s200_s8 = scalar_lea.sflag [#allocation5], %s560_s25 }
  0x39   : > { %v162_v3 = vadd.f32 %v161_v1, %v160_v0  ;;  %v168_v4 = vrot.slane %v167_v2, 4  ;;  %s376_s9 = scalar_lea.vmem %s214_s3, 128  ;;  %p620_p12 = scmp.ne.s32.totalorder %s614_s22, 0 }
  0x3a   : > { %p377_p11 = scmp.ne.s32.totalorder %s214_s3, %s376_s9  ;;  %s443_s10 = smov [#allocation6]  }
  0x3b   : > { %v163_v5 = vrot.slane %v162_v3, 2  ;;  %v169_v6 = vadd.f32 %v168_v4, %v167_v2  ;;  %s380_s15 = sshll.u32 %s443_s10, 4  ;;  %s381_s15 = int_to_ptr.vmem [resolvable:$false] %s380_s15 }
  0x3c   : > { %s192_s29 = ssub.f32 1.0, %s191_s21  ;;  %v195_v29 = vstv %s191_s21  ;;  %p378_p13 = pnand %p377_p11, %p620_p12 }
  0x3d   : > { %v164_v7 = vadd.f32 %v163_v5, %v162_v3  ;;  %v170_v8 = vrot.slane %v169_v6, 2  ;;  %s382_s17 = scalar_lea.vmem %s381_s15, 256  ;;  %p383_p3 = scmp.lt.s32.totalorder %s214_s3, %s381_s15 }
  0x3e   : > { %v193_v27 = vstv %s192_s29  ;;  %p379_p1 = pneg %p378_p13  ;;  %p384_p5 = scmp.lt.s32.totalorder %s382_s17, %s376_s9 }
  0x3f   : > { %v165_v9 = vrot.slane %v164_v7, 1  ;;  %v171_v10 = vadd.f32 %v170_v8, %v169_v6 }
  0x40   : > { %p385_p8 = por %p384_p5, %p383_p3 }
  0x41   : > { %v166_v11 = vadd.f32 %v165_v9, %v164_v7  ;;  %v172_v12 = vrot.slane %v171_v10, 1 }
  0x42   : > { %p386_p10 = pnand %p385_p8, %p379_p1 }
  0x43   : > { %v174_v13 = vmul.f32 0.125, %v166_v11  ;;  %v173_v14 = vadd.f32 %v172_v12, %v171_v10 }
  0x45   : > { %v175_v15 = vmul.f32 8.0, %v174_v13  ;;  %v183_v21 = vsub.f32 %v160_v0, %v174_v13 }
  0x47   : > { %v176_v16 = vmul.f32 %v175_v15, %v174_v13 }
  0x49   : > { %v177_v17 = vsub.f32 %v173_v14, %v176_v16 }
  0x4b   : > { %v179_v18 = vmul.f32 0.14285715, %v177_v17 }
  0x4d   : > { %v180_v19 = vmax.f32 %v179_v18, 0.0 }
  0x4f   : > { %v181_v20 = vadd.f32 1e-09, %v180_v19 }
  0x51   : > { %342 = vrsqrt.f32 %v181_v20 }
  0x5e   : > { %v343_v22 = vpop.eup %342 }
  0x5f   : > { %v184_v23 = vmul.f32 %v343_v22, %v183_v21 }
  0x61   : > { %v291_v24 = vmul.f32 -1.442695, %v184_v23 }
  0x63   : > { %344 = vpow2.f32 %v291_v24 }
  0x70   : > { %v345_v25 = vpop.eup %344 }
  0x71   : > { %v188_v26 = vadd.f32 1.0, %v345_v25 }
  0x73   : > { %346 = vrcp.f32 %v188_v26 }
  0x80   : > { %v347_v28 = vpop.eup %346 }
  0x81   : > { %v194_v30 = vmul.f32 %v347_v28, %v193_v27 }
  0x83   : > { %v196_v31 = vadd.f32 %v195_v29, %v194_v30 }
  0x85   : > { %v197_v32 = vmul.f32 %v196_v31, %v160_v0 }
  0x87   : > { %198 = vst [vmem:[%s159_s30] sm:$0xff] %v197_v32 }
  0x88   : > { %389 = shalt.err (!%p386_p10)
}
  0x89   : > { %s390_s0 = scalar_lea.hbm %s211_s7, 128  ;;  %s394_s24 = scalar_lea.hbm %s609_s2, 256 }
  0x8a   : > { %p391_p2 = scmp.ne.s32.totalorder %s211_s7, %s390_s0  ;;  %p395_p7 = scmp.lt.s32.totalorder %s211_s7, %s609_s2 }
  0x8b   : > { %p396_p0 = scmp.lt.s32.totalorder %s394_s24, %s390_s0 }
  0x8c   : > { %p392_p4 = pnand %p391_p2, %p620_p12 }
  0x8d   : > { %p397_p6 = por %p396_p0, %p395_p7 }
  0x8e   : > { %p393_p9 = pneg %p392_p4 }
  0x90   : > { %p398_p11 = pnand %p397_p6, %p393_p9 }
  0x92   : > { %401 = shalt.err (!%p398_p11)
}
  0x93   : > { %298 = dma.vmem_to_hbm [thread:$0]  (%p620_p12), %s214_s3, 128, %s211_s7, %s200_s8  }
  0x94 PF: > { %s225_s27 = sand.u32 1, %s428_s11   ;;  %p621_p13 = scmp.ne.s32.totalorder %s615_s23, 0 }
  0x95   : > { %p622_p1 = scmp.ge.s32.totalorder %s440_s14, 2  ;;  %s226_s28 = scalar_lea.sflag [#allocation5], %s225_s27 }
  0x97   : > { %p305_p3 = pnand %p622_p1, %p621_p13 }
  0x99   : > { %p306_p5 = pneg %p305_p3 }
  0x9b   : > { %423 = dma.done.wait (%p306_p5), %s226_s28, 128  }
  0x9c   : > { %425 = vsyncadd (%p306_p5), %s226_s28, 4294967168  ;;  %p16_p8 = scmp.ge.s32.totalorder %s487_s16, 4   ;;  %s623_s11 = smov %s432_s12 }
  0x9d   : > { %s624_s12 = smov %s436_s13  ;;  %s625_s13 = smov %s499_s19 }
  0x9e   : > { %s626_s14 = smov %s487_s16  ;;  %18 = sbr.rel (!%p16_p8) target bundleno = 7 (0x7), region = 73 }
  0xa3   :  { %231 = vsyncpa [#allocation4], 1 }
  0xa4   :  { %233 = vsyncpa [#allocation4 + $0x1], 1 }
  0xa5   :  { %234 = vsyncpa [#allocation5], 1 }
  0xa6   :  { %236 = vsyncpa [#allocation5 + $0x1], 1 }

</bundles_post_ra>
